<compile_context>
chip_gen: v7x
topology: tpu7x:2x2x1
jax: 0.10.0
libtpu: 0.0.40
codegen_flags: <defaults>
</compile_context>

<pallas_src>
import functools

import jax
import jax.numpy as jnp
from jax import lax
from jax.experimental import pallas as pl
from jax.experimental.pallas import tpu as pltpu

TEMPERATURE = 0.07
BASE_TEMPERATURE = 0.07


def _round_up(x, m):
    return ((x + m - 1) // m) * m


def _vmem_budget_bytes():
    """Conservative per-core VMEM budget for this kernel."""
    try:
        cap = int(pltpu.get_tpu_info().vmem_capacity_bytes)
    except Exception:
        cap = 64 * 1024 * 1024          # v7x-safe default if query unavailable
    return max(32 * 1024 * 1024, min(cap - 16 * 1024 * 1024, 100 * 1024 * 1024))


# ---------------------------------------------------------------------------
# Shared per-chunk math
# ---------------------------------------------------------------------------
def _chunk_update(raw, drop, la, lc, m, s, p, cnt):
    """Online LSE + positive-pair accumulation over one [tm, tc] logits chunk.

    raw  : [tm, tc] f32 logits (already divided by temperature)
    drop : [tm, tc] bool, True for self-contrast / padded columns
    la   : [tm, 1] int32 anchor labels,  lc: [1, tc] int32 contrast labels
    m,s,p,cnt : [tm,1] running max, sum-exp, sum(pos*raw), sum(pos)
    """
    raw_m = jnp.where(drop, -jnp.inf, raw)
    pos = jnp.logical_and(la == lc, jnp.logical_not(drop))
    cmax = jnp.max(raw_m, axis=1, keepdims=True)
    m_new = jnp.maximum(m, cmax)
    alpha = jnp.exp(m - m_new)
    s_new = alpha * s + jnp.sum(jnp.exp(raw_m - m_new), axis=1, keepdims=True)
    p_new = p + jnp.sum(jnp.where(pos, raw, 0.0), axis=1, keepdims=True)
    c_new = cnt + jnp.sum(jnp.where(pos, 1.0, 0.0), axis=1, keepdims=True)
    return m_new, s_new, p_new, c_new


def _finalize(m, s, p, cnt, loss_scale):
    # sum(mask*log_prob) = sum(mask*raw) - sum(mask) * (max + log sum exp)
    lse = m + jnp.log(s)
    mean_log_prob_pos = (p - cnt * lse) / (cnt + 1e-10)
    return loss_scale * mean_log_prob_pos


# ---------------------------------------------------------------------------
# Main path: contrast VMEM-resident, 1-D grid over anchor-row tiles
# ---------------------------------------------------------------------------
def _supcon_resident_kernel(anchor_ref, contrast_ref, lab_row_ref, lab_col_ref,
                            out_ref, *, inv_temp, loss_scale, tile_m, tile_cols,
                            n_chunks, n_views, n_real_cols, pad_cols):
    i = pl.program_id(0)
    a = anchor_ref[...] * inv_temp                # fold 1/T into the [tm,d] anchor
    la = lab_row_ref[...]                         # [tm, 1] int32

    # Loop-invariant mask helpers, hoisted out of the chunk loop.
    row_l = lax.broadcasted_iota(jnp.int32, (tile_m, tile_cols), 0)
    col_l = lax.broadcasted_iota(jnp.int32, (tile_m, tile_cols), 1)
    # self column (sample r, view 0) sits at global column r*n_views:
    #   drop_self <=> start + col_l == (i*tile_m + row_l)*n_views
    self_match = (i * tile_m + row_l) * n_views - col_l

    def body(c, carry):
        m, s, p, cnt = carry
        cblk = contrast_ref[c]                    # [tile_cols, d], VMEM-resident
        lc = lab_col_ref[pl.ds(c, 1), :]          # [1, tile_cols]
        raw = lax.dot_general(a, cblk, (((1,), (1,)), ((), ())),
                              preferred_element_type=jnp.float32)
        start = c * tile_cols
        drop = self_match == start                # self-contrast removal
        if pad_cols > 0:                          # compiled out when no padding
            drop = jnp.logical_or(drop, col_l >= n_real_cols - start)
        return _chunk_update(raw, drop, la, lc, m, s, p, cnt)

    init = (jnp.full((tile_m, 1), -1e30, jnp.float32),   # running max (finite init)
            jnp.zeros((tile_m, 1), jnp.float32),          # running sum-exp
            jnp.zeros((tile_m, 1), jnp.float32),          # sum(pos * raw)
            jnp.zeros((tile_m, 1), jnp.float32))          # sum(pos)
    m, s, p, cnt = lax.fori_loop(0, n_chunks, body, init, unroll=(n_chunks <= 8))
    out_ref[...] = _finalize(m, s, p, cnt, loss_scale)


# ---------------------------------------------------------------------------
# Fallback path: contrast streamed over a 2-D grid (rows x column chunks)
# ---------------------------------------------------------------------------
def _supcon_stream_kernel(anchor_ref, contrast_ref, lab_row_ref, lab_col_ref,
                          out_ref, m_scr, s_scr, p_scr, c_scr, *,
                          inv_temp, loss_scale, tile_m, tile_cols,
                          n_views, n_real_cols, pad_cols):
    i = pl.program_id(0)
    j = pl.program_id(1)

    @pl.when(j == 0)
    def _init():
        m_scr[...] = jnp.full(m_scr.shape, -1e30, jnp.float32)
        s_scr[...] = jnp.zeros_like(s_scr)
        p_scr[...] = jnp.zeros_like(p_scr)
        c_scr[...] = jnp.zeros_like(c_scr)

    a = anchor_ref[...] * inv_temp                # [tm, d]
    la = lab_row_ref[...]                         # [tm, 1]
    lc = lab_col_ref[...]                         # [1, tile_cols]
    cblk = contrast_ref[0]                        # [tile_cols, d]
    raw = lax.dot_general(a, cblk, (((1,), (1,)), ((), ())),
                          preferred_element_type=jnp.float32)

    row_l = lax.broadcasted_iota(jnp.int32, (tile_m, tile_cols), 0)
    col_l = lax.broadcasted_iota(jnp.int32, (tile_m, tile_cols), 1)
    start = j * tile_cols
    drop = (i * tile_m + row_l) * n_views - col_l == start
    if pad_cols > 0:
        drop = jnp.logical_or(drop, col_l >= n_real_cols - start)

    m_new, s_new, p_new, c_new = _chunk_update(
        raw, drop, la, lc, m_scr[...], s_scr[...], p_scr[...], c_scr[...])
    m_scr[...] = m_new
    s_scr[...] = s_new
    p_scr[...] = p_new
    c_scr[...] = c_new

    @pl.when(j == pl.num_programs(1) - 1)
    def _fin():
        out_ref[...] = _finalize(m_scr[...], s_scr[...], p_scr[...], c_scr[...],
                                 loss_scale)


# ---------------------------------------------------------------------------
# Wrapper
# ---------------------------------------------------------------------------
def supcon_loss_pallas(features, labels=None, *, temperature=TEMPERATURE,
                       base_temperature=BASE_TEMPERATURE, force_stream=False):
    """features: [bsz, n_views, ...]; labels: [bsz] int (None => SimCLR eye mask)."""
    if features.ndim < 3:
        raise ValueError('`features` needs to be [bsz, n_views, ...]')
    if features.ndim > 3:
        features = features.reshape(features.shape[0], features.shape[1], -1)
    bsz, n_views, d = features.shape

    if labels is None:
        labels = jnp.arange(bsz, dtype=jnp.int32)     # unique labels == eye mask
    labels = labels.reshape(-1).astype(jnp.int32)
    if labels.shape[0] != bsz:
        raise ValueError('Num of labels does not match num of features')

    # ---- tiling -------------------------------------------------------------
    # >=2 row tiles when bsz > 8 so the "parallel" axis uses both v7x cores.
    tm = min(256, _round_up(max((bsz + 1) // 2, 1), 8))
    bsz_p = _round_up(bsz, tm)
    pad = bsz_p - bsz
    ts = tm                                            # samples per column chunk
    while ts > 8 and ts % 2 == 0 and ts * n_views > 1024:
        ts //= 2
    tile_cols = ts * n_views
    n_chunks = bsz_p // ts
    n_cols = bsz_p * n_views
    n_real_cols = bsz * n_views
    pad_cols = pad * n_views

    feats_p = features if pad == 0 else jnp.pad(features, ((0, pad), (0, 0), (0, 0)))
    labels_p = labels if pad == 0 else jnp.pad(labels, (0, pad), constant_values=-1)

    # Sample-major contrast: free reshape of the original layout (no transpose).
    # Loss is permutation-invariant over the contrast axis; masks are built for
    # this ordering in-kernel.
    anchor = feats_p[:, 0, :]                                   # [bsz_p, d]
    contrast = feats_p.reshape(n_chunks, tile_cols, d)          # chunked, free
    lab_row = labels_p.reshape(bsz_p, 1)
    lab_col = jnp.repeat(labels_p, n_views).reshape(n_chunks, tile_cols)

    # ---- VMEM budget / path choice -------------------------------------------
    isz = jnp.dtype(features.dtype).itemsize
    budget = _vmem_budget_bytes()
    work_bytes = (12 * tm * tile_cols * 4 + tile_cols * d * isz
                  + 2 * tm * d * max(isz, 4) + (1 << 20))
    resident_need = (2 * n_cols * d * isz          # resident contrast (x2 buffers, conservative)
                     + 2 * n_cols * 4              # resident column labels
                     + 2 * tm * d * isz            # anchor tiles, double-buffered
                     + work_bytes)
    stream_need = (2 * tile_cols * d * isz + 2 * tm * d * isz
                   + 2 * tile_cols * 4 + 4 * tm * 4 + work_bytes)
    use_resident = (not force_stream) and (resident_need + (4 << 20) <= budget)
    need = resident_need if use_resident else stream_need
    vmem_limit = int(min(budget, max(32 * 1024 * 1024, need + (4 << 20))))

    inv_temp = 1.0 / float(temperature)
    loss_scale = -(float(temperature) / float(base_temperature))

    flops = 2 * bsz_p * n_cols * d
    trans = bsz_p * n_cols

    if use_resident:
        cost = pl.CostEstimate(
            flops=flops, transcendentals=trans,
            bytes_accessed=(n_cols * d + bsz_p * d) * isz + (n_cols + 2 * bsz_p) * 4)
        kernel = functools.partial(
            _supcon_resident_kernel,
            inv_temp=inv_temp, loss_scale=loss_scale, tile_m=tm,
            tile_cols=tile_cols, n_chunks=n_chunks, n_views=n_views,
            n_real_cols=n_real_cols, pad_cols=pad_cols)
        grid_spec = pltpu.PrefetchScalarGridSpec(
            num_scalar_prefetch=0,
            grid=(bsz_p // tm,),
            in_specs=[
                pl.BlockSpec((tm, d), lambda i: (i, 0)),                     # anchor tile
                pl.BlockSpec((n_chunks, tile_cols, d), lambda i: (0, 0, 0)), # contrast (resident)
                pl.BlockSpec((tm, 1), lambda i: (i, 0)),                     # anchor labels
                pl.BlockSpec((n_chunks, tile_cols), lambda i: (0, 0)),       # contrast labels (resident)
            ],
            out_specs=pl.BlockSpec((tm, 1), lambda i: (i, 0)),
        )
        per_row = pl.pallas_call(
            kernel,
            out_shape=jax.ShapeDtypeStruct((bsz_p, 1), jnp.float32),
            grid_spec=grid_spec,
            compiler_params=pltpu.CompilerParams(
                dimension_semantics=("parallel",),
                vmem_limit_bytes=vmem_limit),
            cost_estimate=cost,
        )(anchor, contrast, lab_row, lab_col)
    else:
        cost = pl.CostEstimate(
            flops=flops, transcendentals=trans,
            bytes_accessed=(bsz_p // tm) * n_cols * d * isz + bsz_p * d * isz
                           + (n_cols + 2 * bsz_p) * 4)
        kernel = functools.partial(
            _supcon_stream_kernel,
            inv_temp=inv_temp, loss_scale=loss_scale, tile_m=tm,
            tile_cols=tile_cols, n_views=n_views,
            n_real_cols=n_real_cols, pad_cols=pad_cols)
        grid_spec = pltpu.PrefetchScalarGridSpec(
            num_scalar_prefetch=0,
            grid=(bsz_p // tm, n_chunks),
            in_specs=[
                pl.BlockSpec((tm, d), lambda i, j: (i, 0)),
                pl.BlockSpec((1, tile_cols, d), lambda i, j: (j, 0, 0)),
                pl.BlockSpec((tm, 1), lambda i, j: (i, 0)),
                pl.BlockSpec((1, tile_cols), lambda i, j: (j, 0)),
            ],
            out_specs=pl.BlockSpec((tm, 1), lambda i, j: (i, 0)),
            scratch_shapes=[pltpu.VMEM((tm, 1), jnp.float32)] * 4,
        )
        per_row = pl.pallas_call(
            kernel,
            out_shape=jax.ShapeDtypeStruct((bsz_p, 1), jnp.float32),
            grid_spec=grid_spec,
            compiler_params=pltpu.CompilerParams(
                dimension_semantics=("parallel", "arbitrary"),
                vmem_limit_bytes=vmem_limit),
            cost_estimate=cost,
        )(anchor, contrast, lab_row, lab_col)

    # loss.view(anchor_count=1, bsz).mean() over the real (unpadded) rows.
    return jnp.mean(per_row[:bsz, 0])


# ---------------------------------------------------------------------------
# Pure-JAX reference mirroring the PyTorch forward (contrast_mode='one')
# ---------------------------------------------------------------------------
def supcon_loss_ref(features, labels, *, temperature=TEMPERATURE,
                    base_temperature=BASE_TEMPERATURE):
    bsz, n_views, d = features.shape
    if labels is None:
        mask = jnp.eye(bsz, dtype=jnp.float32)
    else:
        labels = labels.reshape(-1, 1)
        mask = (labels == labels.T).astype(jnp.float32)

    contrast_feature = jnp.transpose(features, (1, 0, 2)).reshape(n_views * bsz, d)
    anchor_feature = features[:, 0]
    anchor_count = 1

    anchor_dot_contrast = (anchor_feature @ contrast_feature.T) / temperature
    logits_max = jnp.max(anchor_dot_contrast, axis=1, keepdims=True)
    logits = anchor_dot_contrast - logits_max

    mask = jnp.tile(mask, (anchor_count, n_views))
    n = n_views * bsz
    idx = jnp.arange(bsz * anchor_count)
    logits_mask = jnp.ones((bsz * anchor_count, n), jnp.float32).at[idx, idx].set(0.0)

    mask = mask * logits_mask
    exp_logits = jnp.exp(logits) * logits_mask
    log_prob = logits - jnp.log(jnp.sum(exp_logits, axis=1, keepdims=True))
    mean_log_prob_pos = jnp.sum(mask * log_prob, axis=1) / (jnp.sum(mask, axis=1) + 1e-10)
    loss = -(temperature / base_temperature) * mean_log_prob_pos
    return jnp.mean(loss.reshape(anchor_count, bsz))


if __name__ == "__main__":
    key = jax.random.PRNGKey(0)
    k1, k2, k3, k4, k5, k6 = jax.random.split(key, 6)

    # Case 1: aligned shapes (bsz multiple of 8) -> VMEM-resident path.
    bsz, n_views, feat_dim = 8, 2, 128
    features = jax.random.normal(k1, (bsz, n_views, feat_dim), dtype=jnp.float32)
    features = features / jnp.linalg.norm(features, axis=-1, keepdims=True)
    labels = jax.random.randint(k2, (bsz,), 0, 2, dtype=jnp.int32)

    loss = jax.block_until_ready(supcon_loss_pallas(features, labels))
    loss_ref = jax.block_until_ready(supcon_loss_ref(features, labels))
    assert jnp.allclose(loss, loss_ref, rtol=1e-4, atol=1e-4), (loss, loss_ref)

    # Case 2: ragged shapes (bsz not multiple of 8, D not multiple of 128)
    # exercises the padded-column masking on the resident path.
    bsz2, feat_dim2 = 6, 96
    features2 = jax.random.normal(k3, (bsz2, n_views, feat_dim2), dtype=jnp.float32)
    features2 = features2 / jnp.linalg.norm(features2, axis=-1, keepdims=True)
    labels2 = jax.random.randint(k4, (bsz2,), 0, 2, dtype=jnp.int32)

    loss2 = jax.block_until_ready(supcon_loss_pallas(features2, labels2))
    loss2_ref = jax.block_until_ready(supcon_loss_ref(features2, labels2))
    assert jnp.allclose(loss2, loss2_ref, rtol=1e-4, atol=1e-4), (loss2, loss2_ref)

    # Case 3: streaming fallback path (forced), multi-tile grid with padding.
    bsz3, feat_dim3 = 24, 64
    features3 = jax.random.normal(k5, (bsz3, n_views, feat_dim3), dtype=jnp.float32)
    features3 = features3 / jnp.linalg.norm(features3, axis=-1, keepdims=True)
    labels3 = jax.random.randint(k6, (bsz3,), 0, 3, dtype=jnp.int32)

    loss3 = jax.block_until_ready(supcon_loss_pallas(features3, labels3,
                                                     force_stream=True))
    loss3_ref = jax.block_until_ready(supcon_loss_ref(features3, labels3))
    assert jnp.allclose(loss3, loss3_ref, rtol=1e-4, atol=1e-4), (loss3, loss3_ref)

    print("KERNEL_OK")
</pallas_src>

<mosaic_0001>
module attributes {stable_mosaic.version = 11 : i64} {
  func.func @_supcon_resident_kernel(%arg0: i32, %arg1: memref<8x128xf32, #tpu.memory_space<vmem>>, %arg2: memref<1x16x128xf32, #tpu.memory_space<vmem>>, %arg3: memref<8x1xi32, #tpu.memory_space<vmem>>, %arg4: memref<1x16xi32, #tpu.memory_space<vmem>>, %arg5: memref<8x1xf32, #tpu.memory_space<vmem>>) attributes {dimension_semantics = [#tpu.dimension_semantics<parallel>], iteration_bounds = array<i64: 1>, scalar_prefetch = 0 : i64, scratch_operands = 0 : i64, tpu.core_type = #tpu.core_type<tc>, window_params = [{transform_indices = @transform_0, window_bounds = array<i64: 8, 128>}, {pipeline_mode = #tpu.pipeline_mode<synchronous>, transform_indices = @transform_1, window_bounds = array<i64: 1, 16, 128>}, {transform_indices = @transform_2, window_bounds = array<i64: 8, 1>}, {pipeline_mode = #tpu.pipeline_mode<synchronous>, transform_indices = @transform_3, window_bounds = array<i64: 1, 16>}, {transform_indices = @transform_4, window_bounds = array<i64: 8, 1>}]} {
    %c0 = arith.constant 0 : index
    %c0_0 = arith.constant 0 : index
    %0 = vector.load %arg1[%c0, %c0_0] : memref<8x128xf32, #tpu.memory_space<vmem>>, vector<8x128xf32>
    %cst = arith.constant 14.2857141 : f32
    %1 = vector.broadcast %cst : f32 to vector<8x128xf32>
    %2 = arith.mulf %0, %1 : vector<8x128xf32>
    %c0_1 = arith.constant 0 : index
    %c0_2 = arith.constant 0 : index
    %3 = vector.load %arg3[%c0_1, %c0_2] : memref<8x1xi32, #tpu.memory_space<vmem>>, vector<8x1xi32>
    %4 = tpu.iota {dimensions = array<i32: 0>} : vector<8x16xi32>
    %5 = tpu.iota {dimensions = array<i32: 1>} : vector<8x16xi32>
    %c8_i32 = arith.constant 8 : i32
    %6 = arith.muli %arg0, %c8_i32 : i32
    %7 = vector.broadcast %6 : i32 to vector<8x16xi32>
    %8 = arith.addi %7, %4 : vector<8x16xi32>
    %c2_i32 = arith.constant 2 : i32
    %9 = vector.broadcast %c2_i32 : i32 to vector<8x16xi32>
    %10 = arith.muli %8, %9 : vector<8x16xi32>
    %11 = arith.subi %10, %5 : vector<8x16xi32>
    %cst_3 = arith.constant -1.000000e+30 : f32
    %12 = vector.broadcast %cst_3 : f32 to vector<8x1xf32>
    %cst_4 = arith.constant 0.000000e+00 : f32
    %13 = vector.broadcast %cst_4 : f32 to vector<8x1xf32>
    %cst_5 = arith.constant 0.000000e+00 : f32
    %14 = vector.broadcast %cst_5 : f32 to vector<8x1xf32>
    %cst_6 = arith.constant 0.000000e+00 : f32
    %15 = vector.broadcast %cst_6 : f32 to vector<8x1xf32>
    %c0_i32 = arith.constant 0 : i32
    %16 = arith.index_cast %c0_i32 : i32 to index
    %c0_7 = arith.constant 0 : index
    %c0_8 = arith.constant 0 : index
    %17 = vector.load %arg2[%16, %c0_7, %c0_8] : memref<1x16x128xf32, #tpu.memory_space<vmem>>, vector<1x16x128xf32>
    %18 = vector.shape_cast %17 : vector<1x16x128xf32> to vector<16x128xf32>
    %19 = arith.index_cast %c0_i32 : i32 to index
    %c0_9 = arith.constant 0 : index
    %20 = vector.load %arg4[%19, %c0_9] : memref<1x16xi32, #tpu.memory_space<vmem>>, vector<1x16xi32>
    %cst_10 = arith.constant dense<0.000000e+00> : vector<8x16xf32>
    %21 = tpu.matmul %2, %18, %cst_10 {dimension_numbers = #tpu.dot_dimension_numbers<[1], [1], [0], [0], [0, 0, 1, 0], [], []>} : vector<8x128xf32>, vector<16x128xf32>, vector<8x16xf32> -> vector<8x16xf32>
    %c16_i32 = arith.constant 16 : i32
    %22 = arith.muli %c0_i32, %c16_i32 : i32
    %23 = vector.broadcast %22 : i32 to vector<8x16xi32>
    %24 = arith.cmpi eq, %11, %23 : vector<8x16xi32>
    %cst_11 = arith.constant 0xFF800000 : f32
    %25 = vector.broadcast %cst_11 : f32 to vector<8x16xf32>
    %26 = arith.select %24, %25, %21 : vector<8x16xi1>, vector<8x16xf32>
    %27 = vector.broadcast %3 : vector<8x1xi32> to vector<8x16xi32>
    %28 = vector.broadcast %20 : vector<1x16xi32> to vector<8x16xi32>
    %29 = arith.cmpi eq, %27, %28 : vector<8x16xi32>
    %cst_12 = arith.constant dense<true> : vector<8x16xi1>
    %30 = arith.xori %24, %cst_12 : vector<8x16xi1>
    %31 = arith.andi %29, %30 : vector<8x16xi1>
    %cst_13 = arith.constant dense<0xFF800000> : vector<8xf32>
    %32 = vector.multi_reduction <maximumf>, %26, %cst_13 [1] : vector<8x16xf32> to vector<8xf32>
    %33 = vector.shape_cast %32 : vector<8xf32> to vector<8x1xf32>
    %34 = arith.maximumf %12, %33 : vector<8x1xf32>
    %35 = arith.subf %12, %34 : vector<8x1xf32>
    %36 = math.exp %35 : vector<8x1xf32>
    %37 = arith.mulf %36, %13 : vector<8x1xf32>
    %38 = vector.broadcast %34 : vector<8x1xf32> to vector<8x16xf32>
    %39 = arith.subf %26, %38 : vector<8x16xf32>
    %40 = math.exp %39 : vector<8x16xf32>
    %cst_14 = arith.constant dense<0.000000e+00> : vector<8xf32>
    %41 = vector.multi_reduction <add>, %40, %cst_14 [1] : vector<8x16xf32> to vector<8xf32>
    %42 = vector.shape_cast %41 : vector<8xf32> to vector<8x1xf32>
    %43 = arith.addf %37, %42 : vector<8x1xf32>
    %cst_15 = arith.constant 0.000000e+00 : f32
    %44 = vector.broadcast %cst_15 : f32 to vector<8x16xf32>
    %45 = arith.select %31, %21, %44 : vector<8x16xi1>, vector<8x16xf32>
    %cst_16 = arith.constant dense<0.000000e+00> : vector<8xf32>
    %46 = vector.multi_reduction <add>, %45, %cst_16 [1] : vector<8x16xf32> to vector<8xf32>
    %47 = vector.shape_cast %46 : vector<8xf32> to vector<8x1xf32>
    %48 = arith.addf %14, %47 : vector<8x1xf32>
    %cst_17 = arith.constant 1.000000e+00 : f32
    %cst_18 = arith.constant 0.000000e+00 : f32
    %49 = vector.broadcast %cst_17 : f32 to vector<8x16xf32>
    %50 = vector.broadcast %cst_18 : f32 to vector<8x16xf32>
    %51 = arith.select %31, %49, %50 : vector<8x16xi1>, vector<8x16xf32>
    %cst_19 = arith.constant dense<0.000000e+00> : vector<8xf32>
    %52 = vector.multi_reduction <add>, %51, %cst_19 [1] : vector<8x16xf32> to vector<8xf32>
    %53 = vector.shape_cast %52 : vector<8xf32> to vector<8x1xf32>
    %54 = arith.addf %15, %53 : vector<8x1xf32>
    %c1_i32 = arith.constant 1 : i32
    %55 = math.log %43 : vector<8x1xf32>
    %56 = arith.addf %34, %55 : vector<8x1xf32>
    %57 = arith.mulf %54, %56 : vector<8x1xf32>
    %58 = arith.subf %48, %57 : vector<8x1xf32>
    %cst_20 = arith.constant 1.000000e-10 : f32
    %59 = vector.broadcast %cst_20 : f32 to vector<8x1xf32>
    %60 = arith.addf %54, %59 : vector<8x1xf32>
    %61 = arith.divf %58, %60 : vector<8x1xf32>
    %cst_21 = arith.constant -1.000000e+00 : f32
    %62 = vector.broadcast %cst_21 : f32 to vector<8x1xf32>
    %63 = arith.mulf %62, %61 : vector<8x1xf32>
    %c0_22 = arith.constant 0 : index
    %c0_23 = arith.constant 0 : index
    %64 = vector.load %arg5[%c0_22, %c0_23] : memref<8x1xf32, #tpu.memory_space<vmem>>, vector<8x1xf32>
    tpu.vector_store %arg5[%c0_22, %c0_23], %63 {strides = array<i32>} : memref<8x1xf32, #tpu.memory_space<vmem>>, vector<8x1xf32>,
    return
  }
  func.func @transform_0(%arg0: i32) -> (i32, i32) {
    %c0_i32 = arith.constant 0 : i32
    %c0_i32_0 = arith.constant 0 : i32
    return %arg0, %c0_i32 : i32, i32
  }
  func.func @transform_1(%arg0: i32) -> (i32, i32, i32) {
    %c0_i32 = arith.constant 0 : i32
    %c0_i32_0 = arith.constant 0 : i32
    %c0_i32_1 = arith.constant 0 : i32
    %c0_i32_2 = arith.constant 0 : i32
    return %c0_i32, %c0_i32_0, %c0_i32_1 : i32, i32, i32
  }
  func.func @transform_2(%arg0: i32) -> (i32, i32) {
    %c0_i32 = arith.constant 0 : i32
    %c0_i32_0 = arith.constant 0 : i32
    return %arg0, %c0_i32 : i32, i32
  }
  func.func @transform_3(%arg0: i32) -> (i32, i32) {
    %c0_i32 = arith.constant 0 : i32
    %c0_i32_0 = arith.constant 0 : i32
    %c0_i32_1 = arith.constant 0 : i32
    return %c0_i32, %c0_i32_0 : i32, i32
  }
  func.func @transform_4(%arg0: i32) -> (i32, i32) {
    %c0_i32 = arith.constant 0 : i32
    %c0_i32_0 = arith.constant 0 : i32
    return %arg0, %c0_i32 : i32, i32
  }
}

</mosaic_0001>

<bundles_post_ra>
// kernel: tpu_custom_call.1
= control target key start
LH: loop header
LB: loop body
LE: loop exit
PB: predicated region body
PF: predicated region fallthrough
CT: control target
= control target key end

     0   :  { %9 = vsyncpa [#allocation3], 0  ;;  %s225_s15 = smov [#allocation2]   ;;  %s288_s0 = inlined_call_operand.vmem [shape: f32[8,128], index: 0, kind: input, shape index: {}]   ;;  %s289_s1 = inlined_call_operand.hbm [shape: f32[1,16,128], index: 1, kind: input, shape index: {}]   ;;  %s290_s2 = inlined_call_operand.vmem [shape: s32[8,1], index: 2, kind: input, shape index: {}]   ;;  %s291_s3 = inlined_call_operand.vmem [shape: s32[1,16], index: 3, kind: input, shape index: {}]   ;;  %s292_s4 = inlined_call_operand.vmem [shape: f32[8,1], index: 4, kind: output, shape index: {}]  }
   0x1   :  { %s17_s16 = sshll.u32 %s225_s15, 4  ;;  %s201_s19 = scalar_lea.hbm %s289_s1, 256  ;;  %s18_s16 = int_to_ptr.vmem [resolvable:$true] %s17_s16 }
   0x2   :  { %p202_p0 = scmp.ne.s32.totalorder %s289_s1, %s201_s19  ;;  %p205_p1 = scmp.lt.u32.totalorder %s201_s19, %s289_s1 }
   0x4   :  { %p207_p2 = pnand %p205_p1, %p202_p0 }
   0x6   :  { %210 = shalt.err (!%p207_p2)
}
   0x7   :  { %s211_s24 = scalar_lea.vmem %s18_s16, 256  ;;  %p216_p4 = scmp.lt.s32.totalorder %s18_s16, %s18_s16 }
   0x8   :  { %p212_p3 = scmp.ne.s32.totalorder %s18_s16, %s211_s24  ;;  %p217_p5 = scmp.lt.s32.totalorder %s211_s24, %s211_s24 }
   0xa   :  { %p218_p6 = por %p217_p5, %p216_p4 }
   0xc   :  { %p219_p7 = pnand %p218_p6, %p212_p3 }
   0xe   :  { %222 = shalt.err (!%p219_p7)
}
   0xf   :  { %s226_s25 = smov 128   ;;  %s227_s26 = smov 8  }
  0x10   :  { %23 = dma.hbm_to_vmem [thread:$0]  %s289_s1, 256, %s18_s16, [#allocation3], %s226_s25, %s226_s25, %s227_s26  }
  0x11   :  { %223 = dma.done.wait [#allocation3], 256  }
  0x12   :  { %224 = vsyncadd [#allocation3], 4294967040  ;;  %v228_v0 = vmov 0.0|0.0   ;;  %vm229_vm0 = vmmov 0   ;;  %v230_v1 = vmov 0.0   ;;  %v43_v2 = vld [vmem:[#allocation2] sm:$0xff]  ;;  %v34_v8 = vlaneseq }
  0x13   :  { %181 = vmatprep.subr.bf16.mxu0 %v228_v0  ;;  %178 = vmatprep.mubr.msk.f32.mxu0 %vm229_vm0, %v230_v1  ;;  %v44_v3 = vld [vmem:[#allocation2 + $0x8] sm:$0xff]  ;;  %v31_v5 = vld [vmem:[%s288_s0] sm:$0xff]  ;;  %v231_v7 = vmov 0   ;;  %vm128_vm2 = vcmask 130048   ;;  %vm232_vm3 = vmmov 1   ;;  %vm163_vm7 = vcmask 7168  }
  0x14   :  { %v182_v4 = vpack.c.bf16 %v44_v3, %v43_v2  ;;  %v32_v6 = vmul.f32 14.285714, %v31_v5  ;;  %192 = vset.pattern.permute.xlu0 %v231_v7  ;;  %v35_v9 = vshrl.u32 %v34_v8, 7  ;;  %v37_v10 = vand.u32 127, %v34_v8  ;;  %v33_v17 = vld [vmem:[%s290_s2] sm:$0xff] }
  0x15   :  { %v170_v22 = vld [vmem:[%s291_s3] ss:$0 sm:$0xff] }
  0x16   :  { %183 = vmatpush3.bf16.xpose.msra.mxu0 %v182_v4  ;;  %v41_v11 = vmul.u32 2, %v35_v9 }
  0x18   :  { %v42_v12 = vsub.s32 %v41_v11, %v37_v10 }
  0x1a   :  { %vm116_vm1 = vcmp.eq.s32.totalorder %v42_v12, 0 }
  0x1b   :  { %vm126_vm4 = vmxor %vm116_vm1, %vm232_vm3 }
  0x1d   :  { %179 = vmatmul.mubr.f32.vlgmr.msra.gmra.mrb[0].mxu0 %v32_v6 }
  0xf0   :  { %v112_v13 = vpop.f32.mrb[0].mxu0 }
  0xf1   :  { %v180_v14 = vpop.f32.mrb[1].mxu0  ;;  %v117_v15 = vsel %vm116_vm1, -inf, %v112_v13 }
  0xf2   :  { %v129_v16 = vsel %vm128_vm2, %v117_v15, -inf }
  0xf3   :  { %130 = vmax.xlane.f32.xlu0 %v129_v16 }
 0x109   :  { %119 = vperm.xlu0 %192, %v33_v17  }
 0x180   :  { %v131_v18 = vpop.xlane.xlu0 %130 }
 0x181   :  { %v132_v19 = vmax.f32 %v131_v18, -1e+30 }
 0x183   :  { %v137_v20 = vsub.f32 %v117_v15, %v132_v19  ;;  %v133_v30 = vsub.f32 -1e+30, %v132_v19 }
 0x185   :  { %v138_v21 = vmul.f32 1.442695, %v137_v20  ;;  %v134_v31 = vmul.f32 1.442695, %v133_v30 }
 0x187   :  { %193 = vpow2.f32 %v138_v21 }
 0x188   :  { %v120_v23 = vpop.permute.xlu0 %119  ;;  %195 = vpow2.f32 %v134_v31 }
 0x189   :  { %vm125_vm5 = vcmp.eq.s32.totalorder %v120_v23, %v170_v22 }
 0x18a   :  { %vm127_vm6 = vmand %vm125_vm5, %vm126_vm4 }
 0x18b   :  { %v144_v24 = vsel %vm127_vm6, %v112_v13, 0.0  ;;  %v149_v26 = vsel %vm127_vm6, 1.0, %v230_v1 }
 0x18c   :  { %v150_v28 = vsel %vm128_vm2, %v149_v26, 0.0  ;;  %v145_v29 = vsel %vm128_vm2, %v144_v24, 0.0 }
 0x191   :  { %v194_v25 = vpop.eup %193 }
 0x192   :  { %v140_v27 = vsel %vm128_vm2, %v194_v25, 0.0  ;;  %v196_v32 = vpop.eup %195 }
 0x193   :  { %141 = vadd.xlane.f32.xlu1 %v140_v27  ;;  %v136_v33 = vmul.f32 0.0, %v196_v32 }
 0x197   :  { %151 = vadd.xlane.f32.xlu1 %v150_v28 }
 0x19b   :  { %146 = vadd.xlane.f32.xlu1 %v145_v29 }
 0x220   :  { %v142_v34 = vpop.xlane.xlu1 %141 }
 0x221   :  { %v143_v35 = vadd.f32 %v142_v34, %v136_v33 }
 0x223   :  { %197 = vlog2.f32 %v143_v35 }
 0x224   :  { %v152_v36 = vpop.xlane.xlu1 %151 }
 0x225   :  { %v159_v37 = vadd.f32 1e-10, %v152_v36 }
 0x227   :  { %199 = vrcp.f32 %v159_v37 }
 0x228   :  { %v147_v43 = vpop.xlane.xlu1 %146 }
 0x22d   :  { %v198_v38 = vpop.eup %197 }
 0x22e   :  { %v155_v39 = vmul.f32 0.6931472, %v198_v38 }
 0x230   :  { %v156_v40 = vadd.f32 %v155_v39, %v132_v19 }
 0x231   :  { %v200_v42 = vpop.eup %199 }
 0x232   :  { %v157_v41 = vmul.f32 %v156_v40, %v152_v36 }
 0x234   :  { %v158_v44 = vsub.f32 %v147_v43, %v157_v41 }
 0x236   :  { %v161_v45 = vmul.f32 %v200_v42, %v158_v44 }
 0x238   :  { %v162_v46 = vmul.f32 -1.0, %v161_v45 }
 0x23a   :  { %164 = vst.msk [vmem:[%s292_s4] sm:$0xff] %vm163_vm7, %v162_v46 }
 0x23b   :  { %169 = vsyncpa [#allocation3], 1 }

</bundles_post_ra>
